<compile_context>
chip_gen: v7x
topology: tpu7x:2x2x1
jax: 0.10.0
libtpu: 0.0.40
codegen_flags: <defaults>
</compile_context>

<pallas_src>
import jax
import jax.numpy as jnp
from jax.experimental import pallas as pl
from jax.experimental.pallas import tpu as pltpu


def transit_kernel(x_ref, ss_ref, w_ref, o_ref):
    # x_ref:  (Cin, TL)   NCL-native tile: channels on sublanes, length on lanes
    # ss_ref: (Cin, 2)    col 0 = folded BN scale, col 1 = folded BN shift (f32)
    # w_ref:  (Cout, Cin) 1x1 conv weight (bf16 for the MXU)
    # o_ref:  (Cout, TL)
    x = x_ref[...].astype(jnp.float32)
    scale = ss_ref[:, 0:1]                            # (Cin, 1) -> broadcast over L lanes
    shift = ss_ref[:, 1:2]
    y = jnp.maximum(x * scale + shift, 0.0)           # BatchNorm1d (inference) + ReLU, f32 VPU
    o_ref[...] = jnp.dot(                             # (Cout, Cin) @ (Cin, TL) on the MXU
        w_ref[...], y.astype(w_ref.dtype),
        preferred_element_type=jnp.float32,
    ).astype(o_ref.dtype)


def _choose_l_tile(L, cin, cout, vmem_tile_budget=32 * 1024 * 1024, max_tile=2048):
    """Largest lane-dense L tile whose double-buffered f32 in/out tiles fit the budget."""
    bytes_per_col = 2 * (cin + cout) * 4              # 2 buffers x (in + out) x 4 B
    cap = max(128, vmem_tile_budget // max(bytes_per_col, 1))
    cap = min(max_tile, (cap // 128) * 128)
    if L <= cap:
        return L                                      # full extent (legal: equals array dim)
    return max(128, cap)                              # multiple of 128; tail block is masked


def transit_layer(x_ncl, gamma, beta, running_mean, running_var, conv_w,
                  eps=1e-5, l_tile=None, mxu_dtype=jnp.bfloat16, out_dtype=None):
    """x_ncl: (N, Cin, L) PyTorch NCL layout.  conv_w: (Cout, Cin, 1)."""
    N, Cin, L = x_ncl.shape
    Cout = conv_w.shape[0]
    out_dtype = out_dtype or x_ncl.dtype

    # Fold BN (inference) into a per-channel scale/shift, packed as one (Cin, 2) array.
    scale = (gamma.astype(jnp.float32)
             / jnp.sqrt(running_var.astype(jnp.float32) + eps))             # (Cin,)
    shift = beta.astype(jnp.float32) - running_mean.astype(jnp.float32) * scale
    ss = jnp.stack([scale, shift], axis=-1)                                 # (Cin, 2)

    # 1x1 conv weight as (Cout, Cin); bf16 operands feed the MXU, accumulation is f32.
    w = conv_w[:, :, 0].astype(mxu_dtype)

    if l_tile is None:
        l_tile = _choose_l_tile(L, Cin, Cout)
    grid = (N, pl.cdiv(L, l_tile))

    return pl.pallas_call(
        transit_kernel,
        out_shape=jax.ShapeDtypeStruct((N, Cout, L), out_dtype),
        grid_spec=pltpu.PrefetchScalarGridSpec(
            num_scalar_prefetch=0,
            grid=grid,
            in_specs=[
                pl.BlockSpec((None, Cin, l_tile), lambda n, l: (n, 0, l)),
                pl.BlockSpec((Cin, 2), lambda n, l: (0, 0)),
                pl.BlockSpec((Cout, Cin), lambda n, l: (0, 0)),
            ],
            out_specs=pl.BlockSpec((None, Cout, l_tile), lambda n, l: (n, 0, l)),
        ),
        compiler_params=pltpu.CompilerParams(
            dimension_semantics=("parallel", "parallel"),
            vmem_limit_bytes=48 * 1024 * 1024,   # > v5e/v6e defaults, < v7x physical 64 MiB
        ),
    )(x_ncl.astype(jnp.float32), ss, w)


def transit_layer_ref(x_ncl, gamma, beta, running_mean, running_var, conv_w, eps=1e-5):
    # Pure f32 semantic reference (eval-mode BN + ReLU + k=1 Conv1d, no bias).
    scale = gamma / jnp.sqrt(running_var + eps)
    shift = beta - running_mean * scale
    y = jnp.maximum(x_ncl * scale[None, :, None] + shift[None, :, None], 0.0)
    return jnp.einsum("oc,ncl->nol", conv_w[:, :, 0], y)


if __name__ == "__main__":
    # TODO(synk): training-mode BatchNorm (batch-stat computation + running-stat update)
    # is not implemented; this kernel covers eval / folded-BN forward semantics.
    key = jax.random.PRNGKey(0)
    N, Cin, Cout, L = 2, 32, 16, 256

    k = jax.random.split(key, 6)
    x = jax.random.normal(k[0], (N, Cin, L), dtype=jnp.float32)
    gamma = jax.random.normal(k[1], (Cin,), dtype=jnp.float32) * 0.1 + 1.0
    beta = jax.random.normal(k[2], (Cin,), dtype=jnp.float32) * 0.1
    running_mean = jax.random.normal(k[3], (Cin,), dtype=jnp.float32) * 0.1
    running_var = jax.random.uniform(k[4], (Cin,), dtype=jnp.float32, minval=0.5, maxval=1.5)
    conv_w = jax.random.normal(k[5], (Cout, Cin, 1), dtype=jnp.float32) * (1.0 / Cin ** 0.5)

    out = transit_layer(x, gamma, beta, running_mean, running_var, conv_w)
    out = jax.block_until_ready(out)
    assert out.shape == (N, Cout, L)

    # Semantic (pure f32) reference: loose tolerance covers the bf16 MXU operands.
    ref_f32 = transit_layer_ref(x, gamma, beta, running_mean, running_var, conv_w)
    assert jnp.allclose(out, ref_f32, atol=5e-2, rtol=5e-2)

    # Precision-matched reference (same bf16 operands, f32 accumulation): tight check.
    scale = gamma / jnp.sqrt(running_var + 1e-5)
    shift = beta - running_mean * scale
    y = jnp.maximum(x * scale[None, :, None] + shift[None, :, None], 0.0)
    ref_bf16 = jnp.einsum(
        "oc,ncl->nol",
        conv_w[:, :, 0].astype(jnp.bfloat16),
        y.astype(jnp.bfloat16),
        preferred_element_type=jnp.float32,
    )
    assert jnp.allclose(out, ref_bf16, atol=2e-3, rtol=2e-3)

    print("KERNEL_OK")
</pallas_src>

<mosaic_0001>
module attributes {stable_mosaic.version = 11 : i64} {
  func.func @transit_kernel(%arg0: i32, %arg1: i32, %arg2: memref<1x32x256xf32, #tpu.memory_space<vmem>>, %arg3: memref<32x2xf32, #tpu.memory_space<vmem>>, %arg4: memref<16x32xbf16, #tpu.memory_space<vmem>>, %arg5: memref<1x16x256xf32, #tpu.memory_space<vmem>>) attributes {dimension_semantics = [#tpu.dimension_semantics<parallel>, #tpu.dimension_semantics<parallel>], iteration_bounds = array<i64: 2, 1>, scalar_prefetch = 0 : i64, scratch_operands = 0 : i64, tpu.core_type = #tpu.core_type<tc>, window_params = [{transform_indices = @transform_0, window_bounds = array<i64: 1, 32, 256>}, {pipeline_mode = #tpu.pipeline_mode<synchronous>, transform_indices = @transform_1, window_bounds = array<i64: 32, 2>}, {pipeline_mode = #tpu.pipeline_mode<synchronous>, transform_indices = @transform_2, window_bounds = array<i64: 16, 32>}, {transform_indices = @transform_3, window_bounds = array<i64: 1, 16, 256>}]} {
    %c0 = arith.constant 0 : index
    %c0_0 = arith.constant 0 : index
    %c0_1 = arith.constant 0 : index
    %0 = vector.load %arg2[%c0, %c0_0, %c0_1] : memref<1x32x256xf32, #tpu.memory_space<vmem>>, vector<1x32x256xf32>
    %1 = vector.shape_cast %0 : vector<1x32x256xf32> to vector<32x256xf32>
    %c0_2 = arith.constant 0 : index
    %c0_3 = arith.constant 0 : index
    %2 = vector.load %arg3[%c0_2, %c0_3] : memref<32x2xf32, #tpu.memory_space<vmem>>, vector<32x1xf32>
    %c0_4 = arith.constant 0 : index
    %c1 = arith.constant 1 : index
    %3 = vector.load %arg3[%c0_4, %c1] : memref<32x2xf32, #tpu.memory_space<vmem>>, vector<32x1xf32>
    %4 = vector.broadcast %2 : vector<32x1xf32> to vector<32x256xf32>
    %5 = arith.mulf %1, %4 : vector<32x256xf32>
    %6 = vector.broadcast %3 : vector<32x1xf32> to vector<32x256xf32>
    %7 = arith.addf %5, %6 : vector<32x256xf32>
    %cst = arith.constant 0.000000e+00 : f32
    %8 = vector.broadcast %cst : f32 to vector<32x256xf32>
    %9 = arith.maximumf %7, %8 : vector<32x256xf32>
    %c0_5 = arith.constant 0 : index
    %c0_6 = arith.constant 0 : index
    %10 = vector.load %arg4[%c0_5, %c0_6] : memref<16x32xbf16, #tpu.memory_space<vmem>>, vector<16x32xbf16>
    %11 = arith.truncf %9 : vector<32x256xf32> to vector<32x256xbf16>
    %cst_7 = arith.constant dense<0.000000e+00> : vector<16x256xf32>
    %12 = tpu.matmul %10, %11, %cst_7 {dimension_numbers = #tpu.dot_dimension_numbers<[1], [0], [0], [1], [0, 0, 1, 1], [], []>} : vector<16x32xbf16>, vector<32x256xbf16>, vector<16x256xf32> -> vector<16x256xf32>
    %c0_8 = arith.constant 0 : index
    %c0_9 = arith.constant 0 : index
    %c0_10 = arith.constant 0 : index
    %13 = vector.load %arg5[%c0_8, %c0_9, %c0_10] : memref<1x16x256xf32, #tpu.memory_space<vmem>>, vector<1x16x256xf32>
    %14 = vector.shape_cast %13 : vector<1x16x256xf32> to vector<16x256xf32>
    %15 = vector.shape_cast %12 : vector<16x256xf32> to vector<1x16x256xf32>
    tpu.vector_store %arg5[%c0_8, %c0_9, %c0_10], %15 {strides = array<i32>} : memref<1x16x256xf32, #tpu.memory_space<vmem>>, vector<1x16x256xf32>,
    return
  }
  func.func @transform_0(%arg0: i32, %arg1: i32) -> (i32, i32, i32) {
    %c0_i32 = arith.constant 0 : i32
    %c0_i32_0 = arith.constant 0 : i32
    return %arg0, %c0_i32, %arg1 : i32, i32, i32
  }
  func.func @transform_1(%arg0: i32, %arg1: i32) -> (i32, i32) {
    %c0_i32 = arith.constant 0 : i32
    %c0_i32_0 = arith.constant 0 : i32
    %c0_i32_1 = arith.constant 0 : i32
    return %c0_i32, %c0_i32_0 : i32, i32
  }
  func.func @transform_2(%arg0: i32, %arg1: i32) -> (i32, i32) {
    %c0_i32 = arith.constant 0 : i32
    %c0_i32_0 = arith.constant 0 : i32
    %c0_i32_1 = arith.constant 0 : i32
    return %c0_i32, %c0_i32_0 : i32, i32
  }
  func.func @transform_3(%arg0: i32, %arg1: i32) -> (i32, i32, i32) {
    %c0_i32 = arith.constant 0 : i32
    %c0_i32_0 = arith.constant 0 : i32
    return %arg0, %c0_i32, %arg1 : i32, i32, i32
  }
}

</mosaic_0001>

<bundles_post_ra>
// kernel: tpu_custom_call.1
= control target key start
LH: loop header
LB: loop body
LE: loop exit
PB: predicated region body
PF: predicated region fallthrough
CT: control target
= control target key end

     0   :  { %8 = vsyncpa [#allocation3], 0  ;;  %s883_s0 = inlined_call_operand.hbm [shape: f32[2,32,256], index: 0, kind: input, shape index: {}]   ;;  %s884_s1 = inlined_call_operand.vmem [shape: f32[32,2], index: 1, kind: input, shape index: {}]   ;;  %s885_s2 = inlined_call_operand.vmem [shape: bf16[16,32], index: 2, kind: input, shape index: {}]   ;;  %s886_s3 = inlined_call_operand.hbm [shape: f32[2,16,256], index: 3, kind: output, shape index: {}]  }
   0x1   :  { %10 = vsyncpa [#allocation3 + $0x1], 0 }
   0x2   :  { %11 = vsyncpa [#allocation4], 0 }
   0x3   :  { %13 = vsyncpa [#allocation4 + $0x1], 0  ;;  %s682_s12 = smov 0   ;;  %s684_s13 = smov 0  }
   0x4   :  { %s686_s14 = smov 0   ;;  %s688_s15 = smov 0  }
   0x5   :  { %s690_s16 = smov 0   ;;  %s692_s17 = smov 0  }
   0x6 LB: > { %s447_s18 = sadd.s32 4294967295, %s652_s17   ;;  %s448_s19 = sadd.s32 4294967294, %s652_s17   ;;  %s652_s17 = sphi %s692_s17, %s19_s17   ;;  %s648_s16 = sphi %s690_s16, %s901_s16   ;;  %s644_s15 = sphi %s688_s15, %s900_s15   ;;  %s640_s14 = sphi %s686_s14, %s899_s14   ;;  %s636_s13 = sphi %s684_s13, %s898_s13   ;;  %s632_s12 = sphi %s682_s12, %s897_s12  }
   0x7   : > { %s31_s20 = sadd.s32 1, %s648_s16  ;;  %s40_s21 = sadd.s32 1, %s640_s14 }
   0x8   : > { %p33_p0 = scmp.ge.s32.totalorder %s31_s20, 2  ;;  %p47_p1 = scmp.ne.s32.totalorder %s640_s14, %s636_s13 }
   0x9   : > { %p48_p2 = scmp.eq.s32.totalorder %s652_s17, 0  ;;  %p53_p3 = scmp.ne.s32.totalorder %s636_s13, %s632_s12 }
   0xa   : > { %s903_s20 = smov (%p33_p0, %s31_s20), 0  ;;  %p54_p5 = scmp.eq.s32.totalorder %s447_s18, 0 }
   0xb   : > { %p723_p4 = por %p48_p2, %p47_p1  ;;  %s35_s23 = ssub.s32 %s648_s16, %s903_s20 }
   0xc   : > { %p121_p6 = scmp.eq.s32.totalorder %s447_s18, 1  ;;  %p38_p7 = scmp.eq.s32.totalorder %s35_s23, 0 }
   0xd   : > { %p729_p8 = por %p54_p5, %p53_p3  ;;  %p127_p10 = scmp.eq.s32.totalorder %s448_s19, 1 }
   0xe   : > { %p733_p9 = por %p121_p6, %p47_p1  ;;  %p478_p13 = scmp.lt.s32.totalorder %s652_s17, 2 }
   0xf   : > { %s738_s26 = scalar_select %p38_p7, %s640_s14, %s40_s21  }
  0x10   : > { %s890_s25 = scalar_select %p733_p9, 1, 0 }
  0x11   : > { %p740_p11 = por %p127_p10, %p53_p3  ;;  %s153_s28 = sand.u32 1, %s640_s14  }
  0x12   : > { %s451_s29 = sshll.u32 %s153_s28, 6  ;;  %s464_s30 = sshll.u32 %s648_s16, 10 }
  0x13   : > { %s891_s27 = scalar_select %p740_p11, 1, 0 }
  0x14   : > { %s751_s6 = scalar_lea.hbm %s883_s0, %s464_s30  ;;  %s157_s7 = scalar_lea.vmem [#allocation2], %s451_s29 }
  0x15   : > { %s166_s8 = sshll.u32 %s157_s7, 4  ;;  %p757_p0 = pnand %p478_p13, %p723_p4  ;;  %s753_s8 = int_to_ptr.vmem [resolvable:$true] %s166_s8 }
  0x16   : > { %s762_s10 = scalar_lea.sflag [#allocation3], %s153_s28  ;;  %s540_s11 = scalar_lea.hbm %s751_s6, 1024 }
  0x17   : > { %p541_p2 = scmp.ne.s32.totalorder %s751_s6, %s540_s11  ;;  %p542_p3 = pneg %p757_p0 }
  0x18   : > { %s545_s21 = scalar_lea.hbm %s883_s0, 2048  ;;  %p546_p4 = scmp.lt.u32.totalorder %s751_s6, %s883_s0 }
  0x19   : > { %p543_p5 = pnand %p542_p3, %p541_p2  ;;  %p547_p7 = scmp.lt.u32.totalorder %s545_s21, %s540_s11 }
  0x1a   : > { %p549_p13 = scmp.lt.u32.totalorder %s540_s11, %s751_s6 }
  0x1b   : > { %p544_p6 = pneg %p543_p5  ;;  %p548_p10 = por %p547_p7, %p546_p4 }
  0x1d   : > { %p550_p12 = por %p549_p13, %p548_p10 }
  0x1f   : > { %p551_p1 = pnand %p550_p12, %p544_p6 }
  0x21   : > { %554 = shalt.err (!%p551_p1)
}
  0x22   : > { %s555_s28 = scalar_lea.vmem %s753_s8, 1024  ;;  %s654_s29 = smov [#allocation2]  }
  0x23   : > { %p556_p2 = scmp.ne.s32.totalorder %s753_s8, %s555_s28  ;;  %s560_s30 = sshll.u32 %s654_s29, 4  ;;  %s561_s30 = int_to_ptr.vmem [resolvable:$false] %s560_s30 }
  0x24   : > { %s562_s4 = scalar_lea.vmem %s561_s30, 2048  ;;  %p563_p9 = scmp.lt.s32.totalorder %s753_s8, %s561_s30 }
  0x25   : > { %p558_p5 = pnand %p556_p2, %p542_p3  ;;  %p564_p4 = scmp.lt.s32.totalorder %s562_s4, %s555_s28 }
  0x27   : > { %p559_p11 = pneg %p558_p5  ;;  %p565_p7 = por %p564_p4, %p563_p9 }
  0x29   : > { %p566_p10 = pnand %p565_p7, %p559_p11 }
  0x2b   : > { %569 = shalt.err (!%p566_p10)
}
  0x2c   : > { %s655_s5 = smov 256   ;;  %s656_s7 = smov 16  }
  0x2d   : > { %473 = dma.hbm_to_vmem [thread:$0]  (!%p757_p0), %s751_s6, 1024, %s753_s8, %s762_s10, %s655_s5, %s655_s5, %s656_s7  }
  0x2e   : > { %p174_p12 = scmp.lt.s32.totalorder %s652_s17, 3  ;;  %p893_p1 = scmp.ge.s32.totalorder %s652_s17, 1 }
  0x30   : > { %p175_p3 = pnand %p893_p1, %p174_p12 }
  0x31   : > { %s794_s11 = sand.u32 (!%p175_p3), 1, %s636_s13  }
  0x32   : > { %178 = sbr.rel (%p175_p3) target bundleno = 442 (0x1ba), region = 32  ;;  %s455_s18 = sshll.u32 (!%p175_p3), %s794_s11, 6 }
  0x33   : > { %s181_s19 = scalar_lea.sflag (!%p175_p3), [#allocation3], %s794_s11  ;;  %s798_s21 = scalar_lea.vmem (!%p175_p3), [#allocation2], %s455_s18 }
  0x39   : > { %623 = dma.done.wait (%p729_p8), %s181_s19, 1024  }
  0x3a   : > { %625 = vsyncadd (%p729_p8), %s181_s19, 4294966272  ;;  %v657_v0 = vmov 1   ;;  %v658_v1 = vmov 0   ;;  %v218_v2 = vld [vmem:[%s884_s1] sm:$0xff]  ;;  %v219_v3 = vld [vmem:[%s884_s1 + $0x8] sm:$0xff]  ;;  %vm293_vm0 = vcmask 261120  }
  0x3b   : > { %535 = vset.pattern.permute.xlu1 %v657_v0  ;;  %534 = vset.pattern.permute.xlu0 %v658_v1  ;;  %v220_v4 = vld [vmem:[%s884_s1 + $0x10] sm:$0xff]  ;;  %v221_v5 = vld [vmem:[%s884_s1 + $0x18] sm:$0xff]  ;;  %v210_v6 = vld [vmem:[%s798_s21] sm:$0xff]  ;;  %s456_s4 = sshll.u32 %s794_s11, 5  ;;  %s465_s18 = sshll.u32 %s644_s15, 9 }
  0x3c   : > { %329 = vmatprep.mubr.bf16.mxu0 %v658_v1  ;;  %251 = vperm.xlu1 %535, %v218_v2   ;;  %v211_v7 = vld [vmem:[%s798_s21 + $0x8] sm:$0xff]  ;;  %v212_v12 = vld [vmem:[%s798_s21 + $0x10] sm:$0xff]  ;;  %v213_v13 = vld [vmem:[%s798_s21 + $0x18] sm:$0xff]  ;;  %s206_s5 = scalar_lea.vmem [#allocation5], %s456_s4  ;;  %s834_s6 = scalar_lea.hbm %s886_s3, %s465_s18 }
  0x3d   : > { %224 = vperm.xlu0 %534, %v218_v2   ;;  %v214_v23 = vld [vmem:[%s798_s21 + $0x20] sm:$0xff]  ;;  %v215_v24 = vld [vmem:[%s798_s21 + $0x28] sm:$0xff]  ;;  %v216_v30 = vld [vmem:[%s798_s21 + $0x30] sm:$0xff]  ;;  %s360_s7 = sshll.u32 %s206_s5, 4  ;;  %s345_s8 = scalar_lea.sflag [#allocation4], %s794_s11  ;;  %s829_s7 = int_to_ptr.vmem [resolvable:$true] %s360_s7 }
  0x3e   : > { %v217_v31 = vld [vmem:[%s798_s21 + $0x38] sm:$0xff]  ;;  %v539_v50 = vld [vmem:[%s885_s2] sm:$0xff]   ;;  %s570_s15 = scalar_lea.vmem %s829_s7, 512  ;;  %p894_p9 = scmp.ne.s32.totalorder %s890_s25, 0 }
  0x3f   : > { %p571_p8 = scmp.ne.s32.totalorder %s829_s7, %s570_s15  ;;  %s659_s9 = smov [#allocation5]  }
  0x40   : > { %255 = vperm.xlu1 %535, %v219_v3   ;;  %s574_s10 = sshll.u32 %s659_s9, 4  ;;  %s575_s10 = int_to_ptr.vmem [resolvable:$false] %s574_s10 }
  0x41   : > { %229 = vperm.xlu0 %534, %v219_v3   ;;  %p572_p11 = pnand %p571_p8, %p894_p9  ;;  %s576_s24 = scalar_lea.vmem %s575_s10, 1024 }
  0x42   : > { %p577_p6 = scmp.lt.s32.totalorder %s829_s7, %s575_s10  ;;  %p578_p13 = scmp.lt.s32.totalorder %s576_s24, %s570_s15 }
  0x43   : > { %p573_p0 = pneg %p572_p11 }
  0x44   : > { %536 = vset.pattern.permute.xlu1 %v658_v1  ;;  %p579_p2 = por %p578_p13, %p577_p6 }
  0x45   : > { %234 = vperm.xlu0 %534, %v220_v4   ;;  %239 = vperm.xlu1 %536, %v221_v5  }
  0x46   : > { %p580_p5 = pnand %p579_p2, %p573_p0 }
  0x49   : > { %537 = vset.pattern.permute.xlu0 %v657_v0  ;;  %538 = vset.pattern.permute.xlu1 %v657_v0 }
  0x4a   : > { %259 = vperm.xlu0 %537, %v220_v4   ;;  %263 = vperm.xlu1 %538, %v221_v5  }
  0xbb   : > { %v252_v8 = vpop.permute.xlu1 %251 }
  0xbc   : > { %v225_v9 = vpop.permute.xlu0 %224 }
  0xbd   : > { %v242_v10 = vmul.f32 %v225_v9, %v210_v6  ;;  %v243_v11 = vmul.f32 %v225_v9, %v211_v7 }
  0xbf   : > { %v256_v14 = vpop.permute.xlu1 %255  ;;  %v266_v16 = vadd.f32 %v252_v8, %v242_v10  ;;  %v267_v19 = vadd.f32 %v252_v8, %v243_v11 }
  0xc0   : > { %v230_v15 = vpop.permute.xlu0 %229 }
  0xc1   : > { %v244_v17 = vmul.f32 %v230_v15, %v212_v12  ;;  %v245_v18 = vmul.f32 %v230_v15, %v213_v13  ;;  %v275_v26 = vmax.f32 %v267_v19, 0.0  ;;  %v274_v28 = vmax.f32 %v266_v16, 0.0 }
  0xc3   : > { %v268_v20 = vadd.f32 %v256_v14, %v244_v17  ;;  %v269_v21 = vadd.f32 %v256_v14, %v245_v18 }
  0xc4   : > { %v235_v22 = vpop.permute.xlu0 %234  ;;  %v240_v25 = vpop.permute.xlu1 %239 }
  0xc5   : > { %v277_v27 = vmax.f32 %v269_v21, 0.0  ;;  %v276_v29 = vmax.f32 %v268_v20, 0.0  ;;  %v246_v34 = vmul.f32 %v235_v22, %v214_v23  ;;  %v247_v35 = vmul.f32 %v235_v22, %v215_v24 }
  0xc6   : > { %v248_v36 = vmul.f32 %v240_v25, %v216_v30  ;;  %v249_v37 = vmul.f32 %v240_v25, %v217_v31 }
  0xc7   : > { %v285_v32 = vpack.c.bf16 %v277_v27, %v275_v26  ;;  %v284_v33 = vpack.c.bf16 %v276_v29, %v274_v28 }
  0xc9   : > { %v260_v38 = vpop.permute.xlu0 %259  ;;  %297 = vmatprep.subr.bf16.mxu0 %v285_v32  ;;  %v264_v41 = vpop.permute.xlu1 %263 }
  0xca   : > { %v270_v39 = vadd.f32 %v260_v38, %v246_v34  ;;  %v271_v40 = vadd.f32 %v260_v38, %v247_v35  ;;  %298 = vmatpush1.bf16.msra.mxu0 %v284_v33  ;;  %v272_v42 = vadd.f32 %v264_v41, %v248_v36  ;;  %v273_v43 = vadd.f32 %v264_v41, %v249_v37 }
  0xcc   : > { %v278_v44 = vmax.f32 %v270_v39, 0.0  ;;  %v279_v45 = vmax.f32 %v271_v40, 0.0  ;;  %v280_v46 = vmax.f32 %v272_v42, 0.0  ;;  %v281_v47 = vmax.f32 %v273_v43, 0.0 }
  0xce   : > { %v286_v48 = vpack.c.bf16 %v280_v46, %v278_v44  ;;  %v287_v49 = vpack.c.bf16 %v281_v47, %v279_v45 }
  0xd0   : > { %299 = vmatprep.subr.bf16.mxu0 %v287_v49 }
  0xd1   : > { %300 = vmatpush1.bf16.msra.mxu0 %v286_v48 }
  0xd4   : > { %458 = vmatmul.mubr.msk.bf16.vlgmr.msra.gmra.mrb[0].mxu0 %vm293_vm0, %v539_v50 }
 0x1a7   : > { %v331_v51 = vpop.f32.mrb[0].mxu0 }
 0x1a8   : > { %340 = vst [vmem:[%s206_s5] sm:$0xff] %v331_v51  ;;  %v333_v52 = vpop.f32.mrb[1].mxu0 }
 0x1a9   : > { %341 = vst [vmem:[%s206_s5 + $0x8] sm:$0xff] %v333_v52  ;;  %v335_v53 = vpop.f32.mrb[2].mxu0 }
 0x1aa   : > { %342 = vst [vmem:[%s206_s5 + $0x10] sm:$0xff] %v335_v53  ;;  %v337_v54 = vpop.f32.mrb[3].mxu0 }
 0x1ab   : > { %343 = vst [vmem:[%s206_s5 + $0x18] sm:$0xff] %v337_v54 }
 0x1ac   : > { %583 = shalt.err (!%p580_p5)
}
 0x1ad   : > { %s584_s22 = scalar_lea.hbm %s834_s6, 512  ;;  %s588_s29 = scalar_lea.hbm %s886_s3, 1024 }
 0x1ae   : > { %p585_p4 = scmp.ne.s32.totalorder %s834_s6, %s584_s22  ;;  %p589_p12 = scmp.lt.u32.totalorder %s834_s6, %s886_s3 }
 0x1af   : > { %p590_p1 = scmp.lt.u32.totalorder %s588_s29, %s584_s22  ;;  %p592_p8 = scmp.lt.u32.totalorder %s584_s22, %s834_s6 }
 0x1b0   : > { %p586_p7 = pnand %p585_p4, %p894_p9 }
 0x1b1   : > { %p591_p3 = por %p590_p1, %p589_p12 }
 0x1b2   : > { %p587_p10 = pneg %p586_p7 }
 0x1b3   : > { %p593_p11 = por %p592_p8, %p591_p3 }
 0x1b5   : > { %p594_p0 = pnand %p593_p11, %p587_p10 }
 0x1b7   : > { %597 = shalt.err (!%p594_p0)
}
 0x1b8   : > { %s660_s5 = smov 256   ;;  %s661_s18 = smov 16  }
 0x1b9   : > { %468 = dma.vmem_to_hbm [thread:$0]  (%p894_p9), %s829_s7, 512, %s834_s6, %s345_s8, %s660_s5, %s660_s5, %s661_s18  }
 0x1ba PF: > { %s375_s19 = sand.u32 1, %s632_s12   ;;  %p895_p6 = scmp.ne.s32.totalorder %s891_s27, 0 }
 0x1bb   : > { %p896_p13 = scmp.ge.s32.totalorder %s652_s17, 2  ;;  %s376_s21 = scalar_lea.sflag [#allocation4], %s375_s19 }
 0x1bd   : > { %p475_p2 = pnand %p896_p13, %p895_p6 }
 0x1bf   : > { %627 = dma.done.wait (!%p475_p2), %s376_s21, 512  }
 0x1c0   : > { %629 = vsyncadd (!%p475_p2), %s376_s21, 4294966784  ;;  %s19_s17 = sadd.s32 1, %s652_s17   ;;  %s897_s12 = smov %s636_s13 }
 0x1c1   : > { %p16_p5 = scmp.ge.s32.totalorder %s19_s17, 4   ;;  %s898_s13 = smov %s640_s14 }
 0x1c2   : > { %s899_s14 = smov %s738_s26  ;;  %s900_s15 = smov %s648_s16 }
 0x1c3   : > { %s901_s16 = smov %s903_s20  ;;  %18 = sbr.rel (!%p16_p5) target bundleno = 6 (0x6), region = 77 }
 0x1ca   :  { %381 = vsyncpa [#allocation3], 1 }
 0x1cb   :  { %383 = vsyncpa [#allocation3 + $0x1], 1 }
 0x1cc   :  { %384 = vsyncpa [#allocation4], 1 }
 0x1cd   :  { %386 = vsyncpa [#allocation4 + $0x1], 1 }

</bundles_post_ra>
